<compile_context>
chip_gen: v6e
topology: v6e:2x2x1
jax: 0.10.0
libtpu: 0.0.40
codegen_flags: <defaults>
</compile_context>

<pallas_src>
import functools
import numpy as np

import jax
import jax.numpy as jnp
from jax import lax
from jax.experimental import pallas as pl
from jax.experimental.pallas import tpu as pltpu

VMEM = pltpu.MemorySpace.VMEM
SMEM = pltpu.MemorySpace.SMEM

NEG_SLOPE = 0.2          # LeakyReLU(0.2) used throughout pro_gan_pytorch
NP_SCORE = 128           # lane-dense padding for the final (C, 1) score matmul
TM, TN, TK = 256, 256, 512


def _round_up(x, m):
    return (x + m - 1) // m * m


def _compute_vmem_limit():
    cap = 64 * 1024 * 1024
    try:
        info_fn = getattr(pltpu, "get_tpu_info", None)
        if info_fn is not None:
            cap = int(info_fn().vmem_capacity_bytes)
    except Exception:
        pass
    # leave headroom for compiler scratch / double-buffering; 48 MiB on v7x, 112 on v5e/v6e
    return int(min(max(cap - 16 * 1024 * 1024, 32 * 1024 * 1024), 112 * 1024 * 1024))


VMEM_LIMIT = _compute_vmem_limit()


def _vmem_specs(n):
    return [pl.BlockSpec(memory_space=VMEM) for _ in range(n)]


def _leaky(x):
    return jnp.where(x >= 0.0, x, NEG_SLOPE * x)


# ------------------------------------------------------------------
# Grid-tiled matmul + bias (+ optional LeakyReLU) kernel  (bf16 in, f32 acc)
# ------------------------------------------------------------------

def _matmul_kernel(x_ref, w_ref, b_ref, o_ref, acc_ref, *, negative_slope):
    @pl.when(pl.program_id(2) == 0)
    def _init():
        acc_ref[...] = jnp.zeros_like(acc_ref)

    acc_ref[...] += jnp.dot(x_ref[...], w_ref[...],
                            preferred_element_type=jnp.float32)

    @pl.when(pl.program_id(2) == pl.num_programs(2) - 1)
    def _finalize():
        y = acc_ref[...] + b_ref[...]
        if negative_slope is not None:
            y = jnp.where(y >= 0.0, y, negative_slope * y)
        o_ref[...] = y.astype(o_ref.dtype)


def _tile_dim(dim, target):
    # full-dim block is always legal; otherwise tile (target is (8,128)-friendly) + pad.
    if dim <= target:
        return dim, dim
    return target, _round_up(dim, target)


def matmul_bias_act(x, w, b, negative_slope=None, out_dtype=jnp.float32):
    """y = act(x @ w + b); x/w already bf16, bias f32, tiled double-buffered MXU kernel."""
    M, K = x.shape
    _, N = w.shape
    tm, Mp = _tile_dim(M, TM)
    tk, Kp = _tile_dim(K, TK)
    tn, Np = _tile_dim(N, TN)
    xp = jnp.pad(x, ((0, Mp - M), (0, Kp - K))) if (Mp, Kp) != (M, K) else x
    wp = jnp.pad(w, ((0, Kp - K), (0, Np - N))) if (Kp, Np) != (K, N) else w
    bp = b.reshape(1, -1).astype(jnp.float32)
    if Np != N:
        bp = jnp.pad(bp, ((0, 0), (0, Np - N)))
    grid = (Mp // tm, Np // tn, Kp // tk)
    out = pl.pallas_call(
        functools.partial(_matmul_kernel, negative_slope=negative_slope),
        out_shape=jax.ShapeDtypeStruct((Mp, Np), out_dtype),
        grid=grid,
        in_specs=[pl.BlockSpec((tm, tk), lambda i, j, k: (i, k)),
                  pl.BlockSpec((tk, tn), lambda i, j, k: (k, j)),
                  pl.BlockSpec((1, tn), lambda i, j, k: (0, j))],
        out_specs=pl.BlockSpec((tm, tn), lambda i, j, k: (i, j)),
        scratch_shapes=[pltpu.VMEM((tm, tn), jnp.float32)],
        compiler_params=pltpu.CompilerParams(
            dimension_semantics=("parallel", "parallel", "arbitrary"),
            vmem_limit_bytes=VMEM_LIMIT),
    )(xp, wp, bp)
    if (Mp, Np) != (M, N):
        out = out[:M, :N]
    return out


# ------------------------------------------------------------------
# Fused DisGeneralConvBlock: conv3x3+lrelu -> conv3x3+lrelu -> avgpool2 (+fade-in)
# Convs are 9 per-tap slab matmuls over a flattened padded image (M = H*(W+2)).
# ------------------------------------------------------------------

def _dis_block_kernel(*refs, H, W, Cin, Cout, fade):
    if fade:
        (xf_ref, w1_ref, b1_ref, w2_ref, b2_ref, pool_ref, mask_ref,
         res_ref, alpha_ref, o_ref, mid_ref) = refs
    else:
        (xf_ref, w1_ref, b1_ref, w2_ref, b2_ref, pool_ref, mask_ref,
         o_ref, mid_ref) = refs
        res_ref = alpha_ref = None

    RW = W + 2                      # padded row width
    L1 = H * RW                     # per-tap slab length (valid + 2 junk cols per row)
    Lmid = (H + 3) * RW
    Ho, Wo = H // 2, W // 2

    # zero only the halo head/tail of the scratch; interior (incl. the left/right halo
    # columns, via the column mask) is fully rewritten every grid step -> megacore-safe.
    mid_ref[pl.ds(0, RW + 1), :] = jnp.zeros((RW + 1, Cin), mid_ref.dtype)
    tail = (H + 1) * RW + 1
    mid_ref[pl.ds(tail, Lmid - tail), :] = jnp.zeros((Lmid - tail, Cin), mid_ref.dtype)

    w1 = w1_ref[...]                # (9, Cin, Cin)  bf16
    w2 = w2_ref[...]                # (9, Cin, Cout) bf16
    b1 = b1_ref[...]                # (1, Cin)  f32
    b2 = b2_ref[...]                # (1, Cout) f32

    # ---- conv_1 (3x3, pad=1) + lrelu: 9 per-tap slab matmuls, M = H*(W+2) ----
    acc1 = jnp.zeros((L1, Cin), jnp.float32)
    for t in range(9):
        off = (t // 3) * RW + (t % 3)
        acc1 = acc1 + jnp.dot(xf_ref[0, pl.ds(off, L1), :], w1[t],
                              preferred_element_type=jnp.float32)
    # mask zeroes the wrap-around columns so they land as zeros in the conv_2 halo
    y1 = _leaky(acc1 + b1) * mask_ref[...]
    mid_ref[pl.ds(RW + 1, L1), :] = y1.astype(mid_ref.dtype)

    # ---- conv_2 (3x3, pad=1) + lrelu: 9 per-tap slab matmuls from the scratch ----
    acc2 = jnp.zeros((L1, Cout), jnp.float32)
    for t in range(9):
        off = (t // 3) * RW + (t % 3)
        acc2 = acc2 + jnp.dot(mid_ref[pl.ds(off, L1), :], w2[t],
                              preferred_element_type=jnp.float32)
    y2 = _leaky(acc2 + b2)          # (L1, Cout) f32

    # ---- 2x2 avg-pool (+ optional fade-in) per pooled row ----
    # TODO(synk): when Cout < 128, emit (rows, Wo*Cout)-flattened stores for lane-dense vst.
    pool = pool_ref[...]            # (Wo, W) bf16, already holds the 0.25 factor
    for i in range(Ho):
        r0 = y2[2 * i * RW: 2 * i * RW + W]
        r1 = y2[(2 * i + 1) * RW: (2 * i + 1) * RW + W]
        pooled = jnp.dot(pool, (r0 + r1).astype(jnp.bfloat16),
                         preferred_element_type=jnp.float32)      # (Wo, Cout)
        if fade:
            a = alpha_ref[0, 0]
            pooled = a * pooled + (1.0 - a) * res_ref[0, i].astype(jnp.float32)
        o_ref[0, i] = pooled.astype(o_ref.dtype)


def dis_general_block(p, x, residual=None, alpha=None):
    """DisGeneralConvBlock fused into one pallas_call gridded over batch.

    Optionally applies the progressive-GAN fade-in blend in the epilogue:
        out = alpha * block(x) + (1 - alpha) * residual
    """
    B, H, W, Cin = x.shape
    Cout = p["conv2"]["w"].shape[-1]
    Ho, Wo = H // 2, W // 2
    RW = W + 2
    Lin = (H + 3) * RW
    L1 = H * RW

    # 1-px halo (top/left/right) + 2 slack rows at the bottom for the flat-slab overrun
    xp = jnp.pad(x.astype(jnp.bfloat16), ((0, 0), (1, 2), (1, 1), (0, 0)))
    xf = xp.reshape(B, Lin, Cin)

    pool_np = np.zeros((Wo, W), np.float32)
    pool_np[np.arange(Wo), 2 * np.arange(Wo)] = 0.25
    pool_np[np.arange(Wo), 2 * np.arange(Wo) + 1] = 0.25
    pool = jnp.asarray(pool_np, jnp.bfloat16)
    cols = np.arange(L1) % RW
    mask = jnp.asarray((cols < W).astype(np.float32).reshape(L1, 1))

    fade = residual is not None
    # TODO(synk): tile over output-row stripes (2-row halo) for v7x-scale resolutions;
    # whole-image-per-grid-step only fits VMEM at small/medium image sizes.
    kernel = functools.partial(_dis_block_kernel, H=H, W=W, Cin=Cin, Cout=Cout, fade=fade)
    inputs = [xf,
              p["conv1"]["w"].astype(jnp.bfloat16), p["conv1"]["b"].reshape(1, -1),
              p["conv2"]["w"].astype(jnp.bfloat16), p["conv2"]["b"].reshape(1, -1),
              pool, mask]
    in_specs = [
        pl.BlockSpec((1, Lin, Cin), lambda b: (b, 0, 0)),
        pl.BlockSpec((9, Cin, Cin), lambda b: (0, 0, 0)),
        pl.BlockSpec((1, Cin), lambda b: (0, 0)),
        pl.BlockSpec((9, Cin, Cout), lambda b: (0, 0, 0)),
        pl.BlockSpec((1, Cout), lambda b: (0, 0)),
        pl.BlockSpec((Wo, W), lambda b: (0, 0)),
        pl.BlockSpec((L1, 1), lambda b: (0, 0)),
    ]
    if fade:
        inputs += [residual.astype(jnp.bfloat16), jnp.full((1, 1), alpha, jnp.float32)]
        in_specs += [
            pl.BlockSpec((1, Ho, Wo, Cout), lambda b: (b, 0, 0, 0)),
            pl.BlockSpec((1, 1), lambda b: (0, 0), memory_space=SMEM),
        ]
    return pl.pallas_call(
        kernel,
        out_shape=jax.ShapeDtypeStruct((B, Ho, Wo, Cout), jnp.bfloat16),
        grid=(B,),
        in_specs=in_specs,
        out_specs=pl.BlockSpec((1, Ho, Wo, Cout), lambda b: (b, 0, 0, 0)),
        scratch_shapes=[pltpu.VMEM((Lin, Cin), jnp.bfloat16)],
        compiler_params=pltpu.CompilerParams(
            dimension_semantics=("parallel",),
            vmem_limit_bytes=VMEM_LIMIT),
    )(*inputs)


# ------------------------------------------------------------------
# from-RGB 1x1 convs (and pooled residual path) via the tiled matmul
# ------------------------------------------------------------------

def from_rgb(p, x_nhwc):
    B, H, W, _ = x_nhwc.shape
    out = matmul_bias_act(x_nhwc.reshape(B * H * W, 3).astype(jnp.bfloat16),
                          p["w"].astype(jnp.bfloat16), p["b"],
                          out_dtype=jnp.bfloat16)
    return out.reshape(B, H, W, -1)


def pooled_from_rgb(p, x_nhwc):
    """temporaryDownsampler (AvgPool2d(2)) in bf16 followed by the from-RGB 1x1 matmul."""
    # TODO(synk): fuse the 2x2 average pool into the matmul kernel via strided row loads.
    xb = x_nhwc.astype(jnp.bfloat16)
    pooled = (xb[:, 0::2, 0::2, :] + xb[:, 0::2, 1::2, :]
              + xb[:, 1::2, 0::2, :] + xb[:, 1::2, 1::2, :]) * 0.25
    return from_rgb(p, pooled)


# ------------------------------------------------------------------
# Fused ConDisFinalBlock: mbstd (in-kernel) -> conv3x3+lrelu -> conv4x4+lrelu
#                         -> lrelu(conv_3 score) + embedding projection
# ------------------------------------------------------------------

def _final_block_kernel(x_ref, w1_ref, b1_ref, w2_ref, b2_ref, w3_ref, b3_ref,
                        emb_ref, o_ref, pad_ref, mid_ref, *, B, C, Cp):
    # x_ref: (B, 16, C) bf16 (4x4 spatial flattened);  pad_ref: (B*42, Cp) bf16 scratch
    RW, PR = 6, 42                          # padded row width / rows per padded image
    L1 = (B - 1) * PR + 24                  # per-tap slab length covering every batch item

    # -- minibatch stddev scalar (matches MinibatchStdDev with alpha=1e-8) --
    xf = x_ref[...].astype(jnp.float32)                     # (B, 16, C)
    mu = jnp.mean(xf, axis=0, keepdims=True)
    var = jnp.mean((xf - mu) ** 2, axis=0)                  # (16, C)
    std = jnp.mean(jnp.sqrt(var + 1e-8))                    # scalar

    # -- assemble padded + stddev-augmented slab in VMEM --
    pad_ref[...] = jnp.zeros_like(pad_ref)
    ext = jnp.where(lax.broadcasted_iota(jnp.int32, (4, Cp - C), 1) == 0,
                    std, 0.0).astype(pad_ref.dtype)         # [std, 0, ..., 0] per row
    for b in range(B):
        for h in range(4):
            r0 = b * PR + (h + 1) * RW + 1
            pad_ref[pl.ds(r0, 4), pl.ds(0, C)] = x_ref[b, pl.ds(4 * h, 4), :]
            pad_ref[pl.ds(r0, 4), pl.ds(C, Cp - C)] = ext

    w1 = w1_ref[...]                        # (9, Cp, C) bf16
    b1 = b1_ref[...]                        # (1, C) f32

    # -- conv_1: 9 batched per-tap slab matmuls (M ~= B*42) --
    acc1 = jnp.zeros((L1, C), jnp.float32)
    for t in range(9):
        off = (t // 3) * RW + (t % 3)
        acc1 = acc1 + jnp.dot(pad_ref[pl.ds(off, L1), :], w1[t],
                              preferred_element_type=jnp.float32)
    y1 = _leaky(acc1 + b1)                  # (L1, C), valid rows at b*42 + h*6 + w (w<4)

    # gather the 16 valid pixels per batch item into a (B, 16, C) scratch
    for b in range(B):
        for h in range(4):
            src = b * PR + h * RW
            mid_ref[b, pl.ds(4 * h, 4), :] = y1[src:src + 4].astype(mid_ref.dtype)

    # -- conv_2: 4x4 VALID conv == 16 fixed (B, C) @ (C, C) matmuls --
    w2 = w2_ref[...]                        # (16, C, C) bf16
    b2 = b2_ref[...]                        # (1, C) f32
    y = jnp.zeros((B, C), jnp.float32) + b2
    for t in range(16):
        y = y + jnp.dot(mid_ref[:, t, :], w2[t], preferred_element_type=jnp.float32)
    y = _leaky(y)                           # (B, C)

    # conditional projection: nn.Embedding(max_norm=1) renorm + inner product
    emb = emb_ref[...]                      # (B, C) f32
    nrm = jnp.sqrt(jnp.sum(emb * emb, axis=-1, keepdims=True))
    emb = emb * jnp.where(nrm > 1.0, 1.0 / (nrm + 1e-7), 1.0)
    proj = jnp.sum(y * emb, axis=-1, keepdims=True)         # (B, 1)

    # conv_3 (1x1 -> score), lane-padded to NP_SCORE columns (column 0 is the real score)
    score = jnp.dot(y.astype(jnp.bfloat16), w3_ref[...],
                    preferred_element_type=jnp.float32) + b3_ref[...]
    o_ref[...] = _leaky(score) + proj


def con_dis_final_block(p, x_nhwc, labels):
    """ConDisFinalBlock: mbstd -> conv3x3+lrelu -> conv4x4+lrelu -> lrelu(conv_3) + projection."""
    B, H, W, C = x_nhwc.shape
    assert H == 4 and W == 4
    Cp = p["conv1"]["w"].shape[1]                            # C+1 padded to sublane multiple
    x = x_nhwc.reshape(B, H * W, C).astype(jnp.bfloat16)
    emb = jnp.take(p["embed"], labels.reshape(-1), axis=0)   # (B, C) row gather (glue)
    out = pl.pallas_call(
        functools.partial(_final_block_kernel, B=B, C=C, Cp=Cp),
        out_shape=jax.ShapeDtypeStruct((B, NP_SCORE), jnp.float32),
        in_specs=_vmem_specs(8),
        out_specs=pl.BlockSpec(memory_space=VMEM),
        scratch_shapes=[pltpu.VMEM((B * 42, Cp), jnp.bfloat16),
                        pltpu.VMEM((B, H * W, C), jnp.bfloat16)],
        compiler_params=pltpu.CompilerParams(vmem_limit_bytes=VMEM_LIMIT),
    )(x,
      p["conv1"]["w"].astype(jnp.bfloat16), p["conv1"]["b"].reshape(1, -1),
      p["conv2"]["w"].astype(jnp.bfloat16), p["conv2"]["b"].reshape(1, -1),
      p["conv3"]["w"].astype(jnp.bfloat16), p["conv3"]["b"].reshape(1, -1),
      emb)
    return out[:, 0]                                         # (B,)


# ------------------------------------------------------------------
# Parameter init (equalized-LR scaling baked into the weights)
# ------------------------------------------------------------------

def _eql_scale(k, c_in):
    return np.sqrt(2.0 / (k * k * c_in)).astype(np.float32)


def make_conv_taps(key, c_in, c_out, k):
    w = jax.random.normal(key, (k, k, c_in, c_out), jnp.float32) * _eql_scale(k, c_in)
    return {"w": w.reshape(k * k, c_in, c_out), "b": jnp.zeros((c_out,), jnp.float32)}


def make_conv_flat(key, c_in, c_out, k):
    w = jax.random.normal(key, (k, k, c_in, c_out), jnp.float32) * _eql_scale(k, c_in)
    return {"w": w.reshape(k * k * c_in, c_out), "b": jnp.zeros((c_out,), jnp.float32)}


def init_params(key, num_classes, height, feature_size):
    keys = iter(jax.random.split(key, 3 * height + 8))
    fs = feature_size
    rgb = [make_conv_flat(next(keys), 3, fs, 1)]
    layers = []
    for i in range(height - 1):
        if i > 2:
            c_in = int(fs // 2 ** (i - 2))
            c_out = int(fs // 2 ** (i - 3))
        else:
            c_in, c_out = fs, fs
        layers.append({"conv1": make_conv_taps(next(keys), c_in, c_in, 3),
                       "conv2": make_conv_taps(next(keys), c_in, c_out, 3)})
        rgb.append(make_conv_flat(next(keys), 3, c_in, 1))

    C = fs
    Cp = _round_up(C + 1, 8)            # stddev channel padded to a sublane-friendly count
    k1, k2, k3, k4 = next(keys), next(keys), next(keys), next(keys)
    w1 = jax.random.normal(k1, (3, 3, C + 1, C), jnp.float32) * _eql_scale(3, C + 1)
    w1 = jnp.pad(w1, ((0, 0), (0, 0), (0, Cp - (C + 1)), (0, 0))).reshape(9, Cp, C)
    w2 = (jax.random.normal(k2, (4, 4, C, C), jnp.float32) * _eql_scale(4, C)).reshape(16, C, C)
    w3 = jax.random.normal(k3, (C, 1), jnp.float32) * _eql_scale(1, C)
    w3 = jnp.pad(w3, ((0, 0), (0, NP_SCORE - 1)))                   # lane-dense score matmul
    final = {"conv1": {"w": w1, "b": jnp.zeros((C,), jnp.float32)},
             "conv2": {"w": w2, "b": jnp.zeros((C,), jnp.float32)},
             "conv3": {"w": w3, "b": jnp.zeros((NP_SCORE,), jnp.float32)},
             "embed": jax.random.normal(k4, (num_classes, C), jnp.float32)}
    return {"rgb": rgb, "layers": layers, "final": final}


# ------------------------------------------------------------------
# Module forward
# ------------------------------------------------------------------

def conditional_discriminator(params, x_nchw, labels, height, alpha):
    x = jnp.transpose(x_nchw, (0, 2, 3, 1)).astype(jnp.bfloat16)     # NCHW -> NHWC, bf16
    rgb, layers = params["rgb"], params["layers"]
    if height > 0:
        residual = pooled_from_rgb(rgb[height - 1], x)               # fromRGB(avgpool(x))
        straight_in = from_rgb(rgb[height], x)
        y = dis_general_block(layers[height - 1], straight_in,
                              residual=residual, alpha=alpha)        # fade-in fused in epilogue
        for idx in reversed(range(height - 1)):
            y = dis_general_block(layers[idx], y)
    else:
        y = from_rgb(rgb[0], x)
    return con_dis_final_block(params["final"], y, labels)


# ------------------------------------------------------------------

if __name__ == "__main__":
    key = jax.random.PRNGKey(0)
    kp, kx, kl = jax.random.split(key, 3)

    num_classes, total_height, feature_size = 5, 3, 32
    params = init_params(kp, num_classes, total_height, feature_size)

    height, alpha = 2, 0.6
    batch = 2
    res = 4 * (2 ** height)  # 16
    x = jax.random.normal(kx, (batch, 3, res, res), jnp.float32)     # NCHW, like PyTorch
    labels = jax.random.randint(kl, (batch, 1), 0, num_classes, jnp.int32)

    out = conditional_discriminator(params, x, labels, height, alpha)
    out = jax.block_until_ready(out)
    assert out.shape == (batch,) and out.dtype == jnp.float32
    print("KERNEL_OK")
</pallas_src>

<mosaic_0001>
module attributes {stable_mosaic.version = 11 : i64} {
  func.func @_matmul_kernel(%arg0: i32, %arg1: i32, %arg2: i32, %arg3: memref<128x3xbf16, #tpu.memory_space<vmem>>, %arg4: memref<3x32xbf16, #tpu.memory_space<vmem>>, %arg5: memref<1x32xf32, #tpu.memory_space<vmem>>, %arg6: memref<128x32xbf16, #tpu.memory_space<vmem>>, %arg7: memref<128x32xf32, #tpu.memory_space<vmem>>) attributes {dimension_semantics = [#tpu.dimension_semantics<parallel>, #tpu.dimension_semantics<parallel>, #tpu.dimension_semantics<arbitrary>], iteration_bounds = array<i64: 1, 1, 1>, scalar_prefetch = 0 : i64, scratch_operands = 1 : i64, tpu.core_type = #tpu.core_type<tc>, window_params = [{transform_indices = @transform_0, window_bounds = array<i64: 128, 3>}, {transform_indices = @transform_1, window_bounds = array<i64: 3, 32>}, {transform_indices = @transform_2, window_bounds = array<i64: 1, 32>}, {transform_indices = @transform_3, window_bounds = array<i64: 128, 32>}]} {
    %c0_i32 = arith.constant 0 : i32
    %0 = arith.cmpi eq, %arg2, %c0_i32 : i32
    %1 = arith.extui %0 : i1 to i32
    %c0_i32_0 = arith.constant 0 : i32
    %2 = arith.cmpi ne, %1, %c0_i32_0 : i32
    scf.if %2 {
      %cst_10 = arith.constant 0.000000e+00 : f32
      %12 = vector.broadcast %cst_10 : f32 to vector<128x32xf32>
      %c0_11 = arith.constant 0 : index
      %c0_12 = arith.constant 0 : index
      %13 = vector.load %arg7[%c0_11, %c0_12] : memref<128x32xf32, #tpu.memory_space<vmem>>, vector<128x32xf32>
      tpu.vector_store %arg7[%c0_11, %c0_12], %12 {strides = array<i32>} : memref<128x32xf32, #tpu.memory_space<vmem>>, vector<128x32xf32>,
    } else {
    }
    %c0 = arith.constant 0 : index
    %c0_1 = arith.constant 0 : index
    %3 = vector.load %arg7[%c0, %c0_1] : memref<128x32xf32, #tpu.memory_space<vmem>>, vector<128x32xf32>
    %c0_2 = arith.constant 0 : index
    %c0_3 = arith.constant 0 : index
    %4 = vector.load %arg3[%c0_2, %c0_3] : memref<128x3xbf16, #tpu.memory_space<vmem>>, vector<128x3xbf16>
    %c0_4 = arith.constant 0 : index
    %c0_5 = arith.constant 0 : index
    %5 = vector.load %arg4[%c0_4, %c0_5] : memref<3x32xbf16, #tpu.memory_space<vmem>>, vector<3x32xbf16>
    %cst = arith.constant dense<0.000000e+00> : vector<128x32xf32>
    %6 = tpu.matmul %4, %5, %cst {dimension_numbers = #tpu.dot_dimension_numbers<[1], [0], [0], [1], [0, 0, 1, 1], [], []>} : vector<128x3xbf16>, vector<3x32xbf16>, vector<128x32xf32> -> vector<128x32xf32>
    %7 = arith.addf %3, %6 : vector<128x32xf32>
    %c0_6 = arith.constant 0 : index
    %c0_7 = arith.constant 0 : index
    %8 = vector.load %arg7[%c0_6, %c0_7] : memref<128x32xf32, #tpu.memory_space<vmem>>, vector<128x32xf32>
    tpu.vector_store %arg7[%c0_6, %c0_7], %7 {strides = array<i32>} : memref<128x32xf32, #tpu.memory_space<vmem>>, vector<128x32xf32>,
    %c0_i32_8 = arith.constant 0 : i32
    %9 = arith.cmpi eq, %arg2, %c0_i32_8 : i32
    %10 = arith.extui %9 : i1 to i32
    %c0_i32_9 = arith.constant 0 : i32
    %11 = arith.cmpi ne, %10, %c0_i32_9 : i32
    scf.if %11 {
      %c0_10 = arith.constant 0 : index
      %c0_11 = arith.constant 0 : index
      %12 = vector.load %arg7[%c0_10, %c0_11] : memref<128x32xf32, #tpu.memory_space<vmem>>, vector<128x32xf32>
      %c0_12 = arith.constant 0 : index
      %c0_13 = arith.constant 0 : index
      %13 = vector.load %arg5[%c0_12, %c0_13] : memref<1x32xf32, #tpu.memory_space<vmem>>, vector<1x32xf32>
      %14 = vector.broadcast %13 : vector<1x32xf32> to vector<128x32xf32>
      %15 = arith.addf %12, %14 : vector<128x32xf32>
      %16 = arith.truncf %15 : vector<128x32xf32> to vector<128x32xbf16>
      %c0_14 = arith.constant 0 : index
      %c0_15 = arith.constant 0 : index
      %17 = vector.load %arg6[%c0_14, %c0_15] : memref<128x32xbf16, #tpu.memory_space<vmem>>, vector<128x32xbf16>
      tpu.vector_store %arg6[%c0_14, %c0_15], %16 {strides = array<i32>} : memref<128x32xbf16, #tpu.memory_space<vmem>>, vector<128x32xbf16>,
    } else {
    }
    return
  }
  func.func @transform_0(%arg0: i32, %arg1: i32, %arg2: i32) -> (i32, i32) {
    %c0_i32 = arith.constant 0 : i32
    return %arg0, %arg2 : i32, i32
  }
  func.func @transform_1(%arg0: i32, %arg1: i32, %arg2: i32) -> (i32, i32) {
    %c0_i32 = arith.constant 0 : i32
    return %arg2, %arg1 : i32, i32
  }
  func.func @transform_2(%arg0: i32, %arg1: i32, %arg2: i32) -> (i32, i32) {
    %c0_i32 = arith.constant 0 : i32
    %c0_i32_0 = arith.constant 0 : i32
    return %c0_i32, %arg1 : i32, i32
  }
  func.func @transform_3(%arg0: i32, %arg1: i32, %arg2: i32) -> (i32, i32) {
    %c0_i32 = arith.constant 0 : i32
    return %arg0, %arg1 : i32, i32
  }
}

</mosaic_0001>

<bundles_post_ra>
// kernel: tpu_custom_call.1
= control target key start
LH: loop header
LB: loop body
LE: loop exit
PB: predicated region body
PF: predicated region fallthrough
CT: control target
= control target key end

     0   :  { %vm134_vm0 = vcmask 1040384   ;;  %vm135_vm1 = vcmask 1041408   ;;  %vm109_vm2 = vcmask 23552   ;;  %v486_v1 = vmov 65535   ;;  %s660_s1 = inlined_call_operand.vmem [shape: bf16[3,32], index: 1, kind: input, shape index: {}]   ;;  %s661_s0 = inlined_call_operand.vmem [shape: bf16[128,3], index: 0, kind: input, shape index: {}]   ;;  %s662_s2 = inlined_call_operand.vmem [shape: f32[1,32], index: 2, kind: input, shape index: {}]   ;;  %s663_s3 = inlined_call_operand.vmem [shape: bf16[128,32], index: 3, kind: output, shape index: {}]  }
   0x1   :  { %v68_v0 = vld [vmem:[%s660_s1] sm:$0x3]  ;;  %v136_v2 = vsel %vm134_vm0, 4294967295, %v486_v1  ;;  %v480_v7 = vld [vmem:[%s661_s0 + $0x8] sm:$0xff]   ;;  %vm19_vm3 = vcmask 261120   ;;  %v482_v9 = vld [vmem:[%s661_s0 + $0x10] sm:$0xff]  }
   0x2   :  { %v478_v3 = vld [vmem:[%s661_s0] sm:$0xff]   ;;  %v137_v4 = vsel %vm135_vm1, %v136_v2, 0  ;;  %v481_v8 = vld [vmem:[%s661_s0 + $0x28] sm:$0xff]   ;;  %v487_v10 = vmov 0.0   ;;  %v483_v11 = vld [vmem:[%s661_s0 + $0x30] sm:$0xff]   ;;  %vm377_vm4 = vcmask 257024  }
   0x3   :  { %v479_v5 = vld [vmem:[%s661_s0 + $0x20] sm:$0xff]   ;;  %v139_v6 = vand.u32 %v137_v4, %v68_v0  ;;  %458 = vmatprep.mubr.msk.bf16.mxu0 %vm109_vm2, %v478_v3  ;;  %22 = vst.msk [vmem:[#allocation2 + $0x10] sm:$0xff] %vm19_vm3, %v487_v10  ;;  %20 = vst.msk [vmem:[#allocation2] sm:$0xff] %vm19_vm3, %v487_v10  ;;  %v484_v12 = vld [vmem:[%s661_s0 + $0x18] sm:$0xff]  }
   0x4   :  { %466 = vmatprep.mubr.msk.bf16.mxu1 %vm109_vm2, %v479_v5  ;;  %21 = vst.msk [vmem:[#allocation2 + $0x8] sm:$0xff] %vm19_vm3, %v487_v10  ;;  %23 = vst.msk [vmem:[#allocation2 + $0x18] sm:$0xff] %vm19_vm3, %v487_v10  ;;  %v485_v13 = vld [vmem:[%s661_s0 + $0x38] sm:$0xff]   ;;  %v568_v40 = vld [vmem:[%s662_s2] ss:$0 sm:$0xff] }
   0x5   :  { %456 = vmatprep.subr.bf16.mxu0 %v139_v6  ;;  %474 = vmatprep.subr.bf16.mxu1 %v139_v6  ;;  %24 = vst.msk [vmem:[#allocation2 + $0x20] sm:$0xff] %vm19_vm3, %v487_v10  ;;  %25 = vst.msk [vmem:[#allocation2 + $0x28] sm:$0xff] %vm19_vm3, %v487_v10 }
   0x6   :  { %457 = vmatpush3.bf16.msra.mxu0 %v139_v6  ;;  %475 = vmatpush3.bf16.msra.mxu1 %v139_v6  ;;  %26 = vst.msk [vmem:[#allocation2 + $0x30] sm:$0xff] %vm19_vm3, %v487_v10  ;;  %27 = vst.msk [vmem:[#allocation2 + $0x38] sm:$0xff] %vm19_vm3, %v487_v10 }
   0x7   :  { %28 = vst.msk [vmem:[#allocation2 + $0x40] sm:$0xff] %vm19_vm3, %v487_v10  ;;  %29 = vst.msk [vmem:[#allocation2 + $0x48] sm:$0xff] %vm19_vm3, %v487_v10 }
   0x8   :  { %30 = vst.msk [vmem:[#allocation2 + $0x50] sm:$0xff] %vm19_vm3, %v487_v10  ;;  %31 = vst.msk [vmem:[#allocation2 + $0x58] sm:$0xff] %vm19_vm3, %v487_v10 }
   0x9   :  { %32 = vst.msk [vmem:[#allocation2 + $0x60] sm:$0xff] %vm19_vm3, %v487_v10  ;;  %33 = vst.msk [vmem:[#allocation2 + $0x68] sm:$0xff] %vm19_vm3, %v487_v10  ;;  %459 = vmatmul.mubr.msk.bf16.vlgmr.msra.gmra.mxu0 %vm109_vm2, %v480_v7  ;;  %467 = vmatmul.mubr.msk.bf16.vlgmr.msra.gmra.mxu1 %vm109_vm2, %v481_v8 }
   0xa   :  { %34 = vst.msk [vmem:[#allocation2 + $0x70] sm:$0xff] %vm19_vm3, %v487_v10  ;;  %35 = vst.msk [vmem:[#allocation2 + $0x78] sm:$0xff] %vm19_vm3, %v487_v10  ;;  %462 = vmatprep.mubr.msk.bf16.mxu0 %vm109_vm2, %v482_v9  ;;  %470 = vmatprep.mubr.msk.bf16.mxu1 %vm109_vm2, %v483_v11  ;;  %v38_v14 = vld [vmem:[#allocation2 + $0x10] sm:$0xff]  ;;  %v36_v18 = vld [vmem:[#allocation2] sm:$0xff] }
   0xb   :  { %v39_v24 = vld [vmem:[#allocation2 + $0x18] sm:$0xff]  ;;  %v37_v30 = vld [vmem:[#allocation2 + $0x8] sm:$0xff] }
   0xc   :  { %v40_v43 = vld [vmem:[#allocation2 + $0x20] sm:$0xff]  ;;  %v41_v1 = vld [vmem:[#allocation2 + $0x28] sm:$0xff] }
   0xd   :  { %v42_v36 = vld [vmem:[#allocation2 + $0x30] sm:$0xff]  ;;  %v43_v55 = vld [vmem:[#allocation2 + $0x38] sm:$0xff] }
   0xe   :  { %v44_v19 = vld [vmem:[#allocation2 + $0x40] sm:$0xff]  ;;  %v45_v31 = vld [vmem:[#allocation2 + $0x48] sm:$0xff] }
   0xf   :  { %v46_v15 = vld [vmem:[#allocation2 + $0x50] sm:$0xff]  ;;  %v47_v25 = vld [vmem:[#allocation2 + $0x58] sm:$0xff] }
  0x10   :  { %v48_v44 = vld [vmem:[#allocation2 + $0x60] sm:$0xff]  ;;  %v49_v2 = vld [vmem:[#allocation2 + $0x68] sm:$0xff] }
  0x11   :  { %463 = vmatmul.mubr.msk.bf16.gmra.mxu0 %vm109_vm2, %v484_v12  ;;  %471 = vmatmul.mubr.msk.bf16.gmra.mxu1 %vm109_vm2, %v485_v13  ;;  %v50_v37 = vld [vmem:[#allocation2 + $0x70] sm:$0xff]  ;;  %v51_v56 = vld [vmem:[#allocation2 + $0x78] sm:$0xff] }
  0xc9   :  { %v460_v16 = vpop.f32.mrf.mxu0  ;;  %v468_v17 = vpop.f32.mrf.mxu1 }
  0xca   :  { %v240_v20 = vadd.f32 %v460_v16, %v38_v14  ;;  %v248_v21 = vadd.f32 %v468_v17, %v46_v15 }
  0xcb   :  { %v175_v22 = vpop.f32.mrf.mxu0  ;;  %v207_v23 = vpop.f32.mrf.mxu1 }
  0xcc   :  { %257 = vst.msk [vmem:[#allocation2 + $0x10] sm:$0xff] %vm19_vm3, %v240_v20  ;;  %265 = vst.msk [vmem:[#allocation2 + $0x50] sm:$0xff] %vm19_vm3, %v248_v21  ;;  %v238_v26 = vadd.f32 %v175_v22, %v36_v18  ;;  %v246_v27 = vadd.f32 %v207_v23, %v44_v19 }
  0xcd   :  { %v461_v28 = vpop.f32.mrf.mxu0  ;;  %v469_v29 = vpop.f32.mrf.mxu1 }
  0xce   :  { %255 = vst.msk [vmem:[#allocation2] sm:$0xff] %vm19_vm3, %v238_v26  ;;  %263 = vst.msk [vmem:[#allocation2 + $0x40] sm:$0xff] %vm19_vm3, %v246_v27  ;;  %v241_v32 = vadd.f32 %v461_v28, %v39_v24  ;;  %v249_v33 = vadd.f32 %v469_v29, %v47_v25 }
  0xcf   :  { %v178_v34 = vpop.f32.mrf.mxu0  ;;  %v210_v35 = vpop.f32.mrf.mxu1 }
  0xd0   :  { %258 = vst.msk [vmem:[#allocation2 + $0x18] sm:$0xff] %vm19_vm3, %v241_v32  ;;  %266 = vst.msk [vmem:[#allocation2 + $0x58] sm:$0xff] %vm19_vm3, %v249_v33  ;;  %v239_v38 = vadd.f32 %v178_v34, %v37_v30  ;;  %v247_v39 = vadd.f32 %v210_v35, %v45_v31 }
  0xd1   :  { %v464_v41 = vpop.f32.mrf.mxu0  ;;  %v472_v42 = vpop.f32.mrf.mxu1 }
  0xd2   :  { %256 = vst.msk [vmem:[#allocation2 + $0x8] sm:$0xff] %vm19_vm3, %v239_v38  ;;  %264 = vst.msk [vmem:[#allocation2 + $0x48] sm:$0xff] %vm19_vm3, %v247_v39  ;;  %v244_v45 = vadd.f32 %v464_v41, %v42_v36  ;;  %v252_v46 = vadd.f32 %v472_v42, %v50_v37 }
  0xd3   :  { %v276_v47 = vld [vmem:[#allocation2 + $0x10] sm:$0xff]  ;;  %v191_v49 = vpop.f32.mrf.mxu0  ;;  %v223_v50 = vpop.f32.mrf.mxu1 }
  0xd4   :  { %v284_v48 = vld [vmem:[#allocation2 + $0x50] sm:$0xff]  ;;  %v299_v51 = vadd.f32 %v568_v40, %v276_v47  ;;  %261 = vst.msk [vmem:[#allocation2 + $0x30] sm:$0xff] %vm19_vm3, %v244_v45  ;;  %269 = vst.msk [vmem:[#allocation2 + $0x70] sm:$0xff] %vm19_vm3, %v252_v46  ;;  %v242_v53 = vadd.f32 %v191_v49, %v40_v43  ;;  %v250_v54 = vadd.f32 %v223_v50, %v48_v44 }
  0xd5   :  { %v307_v52 = vadd.f32 %v568_v40, %v284_v48  ;;  %v274_v57 = vld [vmem:[#allocation2] sm:$0xff]  ;;  %v465_v59 = vpop.f32.mrf.mxu0  ;;  %v473_v60 = vpop.f32.mrf.mxu1 }
  0xd6   :  { %v282_v58 = vld [vmem:[#allocation2 + $0x40] sm:$0xff]  ;;  %v433_v61 = vpack.c.bf16 %v299_v51, %v299_v51  ;;  %v297_v63 = vadd.f32 %v568_v40, %v274_v57  ;;  %259 = vst.msk [vmem:[#allocation2 + $0x20] sm:$0xff] %vm19_vm3, %v242_v53  ;;  %267 = vst.msk [vmem:[#allocation2 + $0x60] sm:$0xff] %vm19_vm3, %v250_v54  ;;  %v245_v5 = vadd.f32 %v465_v59, %v43_v55 }
  0xd7   :  { %v441_v62 = vpack.c.bf16 %v307_v52, %v307_v52  ;;  %v305_v0 = vadd.f32 %v568_v40, %v282_v58  ;;  %v277_v3 = vld [vmem:[#allocation2 + $0x18] sm:$0xff]  ;;  %v253_v6 = vadd.f32 %v473_v60, %v51_v56  ;;  %v194_v7 = vpop.f32.mrf.mxu0  ;;  %v226_v8 = vpop.f32.mrf.mxu1 }
  0xd8   :  { %v285_v4 = vld [vmem:[#allocation2 + $0x58] sm:$0xff]  ;;  %380 = vst.msk [vmem:[%s663_s3 + $0x8] sm:$0xf] %vm377_vm4, %v433_v61  ;;  %v431_v9 = vpack.c.bf16 %v297_v63, %v297_v63  ;;  %v300_v11 = vadd.f32 %v568_v40, %v277_v3  ;;  %v243_v15 = vadd.f32 %v194_v7, %v41_v1  ;;  %v251_v16 = vadd.f32 %v226_v8, %v49_v2 }
  0xd9   :  { %388 = vst.msk [vmem:[%s663_s3 + $0x28] sm:$0xf] %vm377_vm4, %v441_v62  ;;  %v439_v10 = vpack.c.bf16 %v305_v0, %v305_v0  ;;  %v308_v12 = vadd.f32 %v568_v40, %v285_v4  ;;  %v275_v13 = vld [vmem:[#allocation2 + $0x8] sm:$0xff] }
  0xda   :  { %v283_v14 = vld [vmem:[#allocation2 + $0x48] sm:$0xff]  ;;  %262 = vst.msk [vmem:[#allocation2 + $0x38] sm:$0xff] %vm19_vm3, %v245_v5  ;;  %270 = vst.msk [vmem:[#allocation2 + $0x78] sm:$0xff] %vm19_vm3, %v253_v6  ;;  %v434_v17 = vpack.c.bf16 %v300_v11, %v300_v11  ;;  %v298_v19 = vadd.f32 %v568_v40, %v275_v13 }
  0xdb   :  { %378 = vst.msk [vmem:[%s663_s3] sm:$0xf] %vm377_vm4, %v431_v9  ;;  %386 = vst.msk [vmem:[%s663_s3 + $0x20] sm:$0xf] %vm377_vm4, %v439_v10  ;;  %v442_v18 = vpack.c.bf16 %v308_v12, %v308_v12  ;;  %v306_v20 = vadd.f32 %v568_v40, %v283_v14  ;;  %v280_v21 = vld [vmem:[#allocation2 + $0x30] sm:$0xff] }
  0xdc   :  { %v288_v22 = vld [vmem:[#allocation2 + $0x70] sm:$0xff]  ;;  %260 = vst.msk [vmem:[#allocation2 + $0x28] sm:$0xff] %vm19_vm3, %v243_v15  ;;  %268 = vst.msk [vmem:[#allocation2 + $0x68] sm:$0xff] %vm19_vm3, %v251_v16  ;;  %v432_v23 = vpack.c.bf16 %v298_v19, %v298_v19  ;;  %v303_v25 = vadd.f32 %v568_v40, %v280_v21 }
  0xdd   :  { %381 = vst.msk [vmem:[%s663_s3 + $0xc] sm:$0xf] %vm377_vm4, %v434_v17  ;;  %389 = vst.msk [vmem:[%s663_s3 + $0x2c] sm:$0xf] %vm377_vm4, %v442_v18  ;;  %v440_v24 = vpack.c.bf16 %v306_v20, %v306_v20  ;;  %v311_v26 = vadd.f32 %v568_v40, %v288_v22  ;;  %v278_v27 = vld [vmem:[#allocation2 + $0x20] sm:$0xff] }
  0xde   :  { %v286_v28 = vld [vmem:[#allocation2 + $0x60] sm:$0xff]  ;;  %379 = vst.msk [vmem:[%s663_s3 + $0x4] sm:$0xf] %vm377_vm4, %v432_v23  ;;  %v437_v29 = vpack.c.bf16 %v303_v25, %v303_v25  ;;  %v301_v31 = vadd.f32 %v568_v40, %v278_v27 }
  0xdf   :  { %387 = vst.msk [vmem:[%s663_s3 + $0x24] sm:$0xf] %vm377_vm4, %v440_v24  ;;  %v445_v30 = vpack.c.bf16 %v311_v26, %v311_v26  ;;  %v309_v32 = vadd.f32 %v568_v40, %v286_v28 }
  0xe0   :  { %384 = vst.msk [vmem:[%s663_s3 + $0x18] sm:$0xf] %vm377_vm4, %v437_v29  ;;  %v435_v33 = vpack.c.bf16 %v301_v31, %v301_v31 }
  0xe1   :  { %392 = vst.msk [vmem:[%s663_s3 + $0x38] sm:$0xf] %vm377_vm4, %v445_v30  ;;  %v443_v34 = vpack.c.bf16 %v309_v32, %v309_v32  ;;  %v281_v35 = vld [vmem:[#allocation2 + $0x38] sm:$0xff] }
  0xe2   :  { %v289_v36 = vld [vmem:[#allocation2 + $0x78] sm:$0xff]  ;;  %v304_v37 = vadd.f32 %v568_v40, %v281_v35  ;;  %382 = vst.msk [vmem:[%s663_s3 + $0x10] sm:$0xf] %vm377_vm4, %v435_v33 }
  0xe3   :  { %v312_v38 = vadd.f32 %v568_v40, %v289_v36  ;;  %390 = vst.msk [vmem:[%s663_s3 + $0x30] sm:$0xf] %vm377_vm4, %v443_v34  ;;  %v279_v39 = vld [vmem:[#allocation2 + $0x28] sm:$0xff] }
  0xe4   :  { %v287_v41 = vld [vmem:[#allocation2 + $0x68] sm:$0xff]  ;;  %v438_v42 = vpack.c.bf16 %v304_v37, %v304_v37  ;;  %v302_v44 = vadd.f32 %v568_v40, %v279_v39 }
  0xe5   :  { %v446_v43 = vpack.c.bf16 %v312_v38, %v312_v38  ;;  %v310_v45 = vadd.f32 %v568_v40, %v287_v41 }
  0xe6   :  { %385 = vst.msk [vmem:[%s663_s3 + $0x1c] sm:$0xf] %vm377_vm4, %v438_v42  ;;  %v436_v46 = vpack.c.bf16 %v302_v44, %v302_v44 }
  0xe7   :  { %393 = vst.msk [vmem:[%s663_s3 + $0x3c] sm:$0xf] %vm377_vm4, %v446_v43  ;;  %v444_v47 = vpack.c.bf16 %v310_v45, %v310_v45 }
  0xe8   :  { %383 = vst.msk [vmem:[%s663_s3 + $0x14] sm:$0xf] %vm377_vm4, %v436_v46 }
  0xe9   :  { %391 = vst.msk [vmem:[%s663_s3 + $0x34] sm:$0xf] %vm377_vm4, %v444_v47 }

</bundles_post_ra>
